<compile_context>
chip_gen: v7x
topology: tpu7x:2x2x1
jax: 0.10.0
libtpu: 0.0.40
codegen_flags: <defaults>
</compile_context>

<pallas_src>
import jax
import jax.numpy as jnp
from jax.experimental import pallas as pl
from jax.experimental.pallas import tpu as pltpu

EPS = 1e-5
LANE = 128
VMEM_LIMIT_BYTES = 16 * 1024 * 1024


def _round_up(n, m):
    return ((n + m - 1) // m) * m


def _bn_relu(h, gamma, beta):
    """Training-mode BatchNorm folded to per-feature scale/shift, then ReLU.

    sum(h) and sum(h*h) are independent reductions (overlap on the XLUs); the
    biased variance comes from E[h^2] - mean^2, clamped at 0 against f32
    cancellation before rsqrt (rsqrt runs on the EUP).
    """
    inv_b = 1.0 / h.shape[0]                                 # static batch size
    s = jnp.sum(h, axis=0, keepdims=True)                    # [1, F]
    s2 = jnp.sum(h * h, axis=0, keepdims=True)               # [1, F], independent of s
    mean = s * inv_b
    var = jnp.maximum(s2 * inv_b - mean * mean, 0.0)
    inv_std = jax.lax.rsqrt(var + EPS)                       # EUP
    return jnp.maximum((h - mean) * (gamma * inv_std) + beta, 0.0)


def mlp_kernel(x_ref, slab_ref, o_ref):
    F = x_ref.shape[1]  # padded feature width (lane-dense, multiple of 128)

    # Constant slab layout (rows):
    #   [0,      F)  : w1  (F x F, zero-padded)
    #   [F,    2*F)  : w2
    #   [2*F,  3*F)  : w3
    #   [3*F, 3*F+8) : per-feature rows [g1, be1, g2, be2, b3, 0, 0, 0]
    w1 = slab_ref[0 * F:1 * F, :]
    w2 = slab_ref[1 * F:2 * F, :]
    w3 = slab_ref[2 * F:3 * F, :]
    p = 3 * F
    g1, be1 = slab_ref[p + 0:p + 1, :], slab_ref[p + 1:p + 2, :]
    g2, be2 = slab_ref[p + 2:p + 3, :], slab_ref[p + 3:p + 4, :]
    b3 = slab_ref[p + 4:p + 5, :]

    x = x_ref[...]

    # layer1: Linear (bias folded away by BN) + BatchNorm1d + ReLU
    h1 = jnp.dot(x, w1, preferred_element_type=jnp.float32)
    h1 = _bn_relu(h1, g1, be1)

    # layer2: Linear + BatchNorm1d + ReLU
    h2 = jnp.dot(h1, w2, preferred_element_type=jnp.float32)
    h2 = _bn_relu(h2, g2, be2)

    # layer3: Linear; 128-lane-dense store (real columns sliced off in the wrapper)
    o_ref[...] = (jnp.dot(h2, w3, preferred_element_type=jnp.float32)
                  + b3).astype(o_ref.dtype)


def prepare_params(raw_params):
    """Drop dead pre-BN biases, pad every feature dim (incl. in_dim) to 128 lanes,
    and pack ALL constant operands into one slab -> a single input DMA."""
    (w1, b1, g1, be1, w2, b2, g2, be2, w3, b3) = raw_params
    del b1, b2  # bias before BatchNorm is exactly cancelled by the mean subtraction

    in_dim, h1 = w1.shape
    _, h2 = w2.shape
    _, od = w3.shape
    fmax = _round_up(max(in_dim, h1, h2, od), LANE)

    def pad_sq(a):  # zero-pad a weight matrix to (fmax, fmax)
        return jnp.pad(a, ((0, fmax - a.shape[0]), (0, fmax - a.shape[1])))

    def row(v):     # zero-pad a per-feature vector to one (1, fmax) row
        v = jnp.asarray(v, jnp.float32).reshape(1, -1)
        return jnp.pad(v, ((0, 0), (0, fmax - v.shape[1])))

    pvec = jnp.concatenate(
        [row(g1), row(be1), row(g2), row(be2), row(b3),
         jnp.zeros((3, fmax), jnp.float32)],   # pad to a full sublane tile (8 rows)
        axis=0)

    slab = jnp.concatenate([pad_sq(w1), pad_sq(w2), pad_sq(w3), pvec], axis=0)
    return slab, od


def net_forward(x, slab, out_dim):
    B = x.shape[0]
    F = slab.shape[1]
    x_p = jnp.pad(x, ((0, 0), (0, F - x.shape[1])))          # lane-dense matmul LHS

    # Single block, no grid -> no double-buffering; resident footprint is ~nbytes.
    nbytes = 4 * (x_p.size + slab.size + B * F               # inputs + output
                  + 4 * B * F)                               # activation headroom
    assert nbytes < VMEM_LIMIT_BYTES, "single-block design exceeds VMEM budget"

    vmem = pl.BlockSpec(memory_space=pltpu.MemorySpace.VMEM)
    cost = pl.CostEstimate(
        flops=2 * B * F * F * 3,
        transcendentals=2 * F,
        bytes_accessed=4 * (x_p.size + slab.size + B * F))

    out_padded = pl.pallas_call(
        mlp_kernel,
        out_shape=jax.ShapeDtypeStruct((B, F), jnp.float32),
        in_specs=[vmem, vmem],
        out_specs=vmem,
        compiler_params=pltpu.CompilerParams(vmem_limit_bytes=VMEM_LIMIT_BYTES),
        cost_estimate=cost,
    )(x_p, slab)
    return out_padded[:, :out_dim]


def init_params(key, in_dim, n_hidden_1, n_hidden_2, out_dim):
    ks = jax.random.split(key, 6)

    def linear(kw, kb, fan_in, fan_out):
        bound = 1.0 / jnp.sqrt(fan_in)
        w = jax.random.uniform(kw, (fan_in, fan_out), jnp.float32, -bound, bound)
        b = jax.random.uniform(kb, (1, fan_out), jnp.float32, -bound, bound)
        return w, b

    w1, b1 = linear(ks[0], ks[1], in_dim, n_hidden_1)
    w2, b2 = linear(ks[2], ks[3], n_hidden_1, n_hidden_2)
    w3, b3 = linear(ks[4], ks[5], n_hidden_2, out_dim)

    g1 = jnp.ones((1, n_hidden_1), jnp.float32)
    be1 = jnp.zeros((1, n_hidden_1), jnp.float32)
    g2 = jnp.ones((1, n_hidden_2), jnp.float32)
    be2 = jnp.zeros((1, n_hidden_2), jnp.float32)

    return (w1, b1, g1, be1, w2, b2, g2, be2, w3, b3)


def reference_forward(x, raw_params):
    # Pure-JAX reference mirroring PyTorch training-mode forward (keeps b1/b2 so the
    # bias-before-BN cancellation in the kernel is verified, not assumed).
    (w1, b1, g1, be1, w2, b2, g2, be2, w3, b3) = raw_params

    def bn_relu(h, g, be):
        m = h.mean(0, keepdims=True)
        v = ((h - m) ** 2).mean(0, keepdims=True)
        return jnp.maximum((h - m) * jax.lax.rsqrt(v + EPS) * g + be, 0.0)

    h = bn_relu(x @ w1 + b1, g1, be1)
    h = bn_relu(h @ w2 + b2, g2, be2)
    return h @ w3 + b3


if __name__ == "__main__":
    B, in_dim, n_hidden_1, n_hidden_2, out_dim = 8, 32, 64, 64, 16

    key = jax.random.PRNGKey(0)
    kx, kp = jax.random.split(key)
    x = jax.random.normal(kx, (B, in_dim), jnp.float32)
    raw_params = init_params(kp, in_dim, n_hidden_1, n_hidden_2, out_dim)
    slab, od = prepare_params(raw_params)

    out = net_forward(x, slab, od)
    jax.block_until_ready(out)

    ref = reference_forward(x, raw_params)
    assert out.shape == (B, out_dim)
    assert jnp.allclose(out, ref, atol=1e-4, rtol=1e-4)

    print("KERNEL_OK")
</pallas_src>

<mosaic_0001>
module attributes {stable_mosaic.version = 11 : i64} {
  func.func @mlp_kernel(%arg0: memref<8x128xf32, #tpu.memory_space<vmem>>, %arg1: memref<392x128xf32, #tpu.memory_space<vmem>>, %arg2: memref<8x128xf32, #tpu.memory_space<vmem>>) attributes {dimension_semantics = [], scalar_prefetch = 0 : i64, scratch_operands = 0 : i64, tpu.core_type = #tpu.core_type<tc>} {
    %c0 = arith.constant 0 : index
    %c0_0 = arith.constant 0 : index
    %0 = vector.load %arg1[%c0, %c0_0] : memref<392x128xf32, #tpu.memory_space<vmem>>, vector<128x128xf32>
    %c128 = arith.constant 128 : index
    %c0_1 = arith.constant 0 : index
    %1 = vector.load %arg1[%c128, %c0_1] : memref<392x128xf32, #tpu.memory_space<vmem>>, vector<128x128xf32>
    %c256 = arith.constant 256 : index
    %c0_2 = arith.constant 0 : index
    %2 = vector.load %arg1[%c256, %c0_2] : memref<392x128xf32, #tpu.memory_space<vmem>>, vector<128x128xf32>
    %c384 = arith.constant 384 : index
    %c0_3 = arith.constant 0 : index
    %3 = vector.load %arg1[%c384, %c0_3] : memref<392x128xf32, #tpu.memory_space<vmem>>, vector<1x128xf32>
    %c385 = arith.constant 385 : index
    %c0_4 = arith.constant 0 : index
    %4 = vector.load %arg1[%c385, %c0_4] : memref<392x128xf32, #tpu.memory_space<vmem>>, vector<1x128xf32>
    %c386 = arith.constant 386 : index
    %c0_5 = arith.constant 0 : index
    %5 = vector.load %arg1[%c386, %c0_5] : memref<392x128xf32, #tpu.memory_space<vmem>>, vector<1x128xf32>
    %c387 = arith.constant 387 : index
    %c0_6 = arith.constant 0 : index
    %6 = vector.load %arg1[%c387, %c0_6] : memref<392x128xf32, #tpu.memory_space<vmem>>, vector<1x128xf32>
    %c388 = arith.constant 388 : index
    %c0_7 = arith.constant 0 : index
    %7 = vector.load %arg1[%c388, %c0_7] : memref<392x128xf32, #tpu.memory_space<vmem>>, vector<1x128xf32>
    %c0_8 = arith.constant 0 : index
    %c0_9 = arith.constant 0 : index
    %8 = vector.load %arg0[%c0_8, %c0_9] : memref<8x128xf32, #tpu.memory_space<vmem>>, vector<8x128xf32>
    %cst = arith.constant dense<0.000000e+00> : vector<8x128xf32>
    %9 = tpu.matmul %8, %0, %cst {dimension_numbers = #tpu.dot_dimension_numbers<[1], [0], [0], [1], [0, 0, 1, 1], [], []>} : vector<8x128xf32>, vector<128x128xf32>, vector<8x128xf32> -> vector<8x128xf32>
    %cst_10 = arith.constant dense<0.000000e+00> : vector<128xf32>
    %10 = vector.multi_reduction <add>, %9, %cst_10 [0] : vector<8x128xf32> to vector<128xf32>
    %11 = vector.shape_cast %10 : vector<128xf32> to vector<1x128xf32>
    %12 = arith.mulf %9, %9 : vector<8x128xf32>
    %cst_11 = arith.constant dense<0.000000e+00> : vector<128xf32>
    %13 = vector.multi_reduction <add>, %12, %cst_11 [0] : vector<8x128xf32> to vector<128xf32>
    %14 = vector.shape_cast %13 : vector<128xf32> to vector<1x128xf32>
    %cst_12 = arith.constant 1.250000e-01 : f32
    %15 = vector.broadcast %cst_12 : f32 to vector<1x128xf32>
    %16 = arith.mulf %11, %15 : vector<1x128xf32>
    %cst_13 = arith.constant 1.250000e-01 : f32
    %17 = vector.broadcast %cst_13 : f32 to vector<1x128xf32>
    %18 = arith.mulf %14, %17 : vector<1x128xf32>
    %19 = arith.mulf %16, %16 : vector<1x128xf32>
    %20 = arith.subf %18, %19 : vector<1x128xf32>
    %cst_14 = arith.constant 0.000000e+00 : f32
    %21 = vector.broadcast %cst_14 : f32 to vector<1x128xf32>
    %22 = arith.maximumf %20, %21 : vector<1x128xf32>
    %cst_15 = arith.constant 9.99999974E-6 : f32
    %23 = vector.broadcast %cst_15 : f32 to vector<1x128xf32>
    %24 = arith.addf %22, %23 : vector<1x128xf32>
    %25 = math.rsqrt %24 : vector<1x128xf32>
    %26 = vector.broadcast %16 : vector<1x128xf32> to vector<8x128xf32>
    %27 = arith.subf %9, %26 : vector<8x128xf32>
    %28 = arith.mulf %3, %25 : vector<1x128xf32>
    %29 = vector.broadcast %28 : vector<1x128xf32> to vector<8x128xf32>
    %30 = arith.mulf %27, %29 : vector<8x128xf32>
    %31 = vector.broadcast %4 : vector<1x128xf32> to vector<8x128xf32>
    %32 = arith.addf %30, %31 : vector<8x128xf32>
    %cst_16 = arith.constant 0.000000e+00 : f32
    %33 = vector.broadcast %cst_16 : f32 to vector<8x128xf32>
    %34 = arith.maximumf %32, %33 : vector<8x128xf32>
    %cst_17 = arith.constant dense<0.000000e+00> : vector<8x128xf32>
    %35 = tpu.matmul %34, %1, %cst_17 {dimension_numbers = #tpu.dot_dimension_numbers<[1], [0], [0], [1], [0, 0, 1, 1], [], []>} : vector<8x128xf32>, vector<128x128xf32>, vector<8x128xf32> -> vector<8x128xf32>
    %cst_18 = arith.constant dense<0.000000e+00> : vector<128xf32>
    %36 = vector.multi_reduction <add>, %35, %cst_18 [0] : vector<8x128xf32> to vector<128xf32>
    %37 = vector.shape_cast %36 : vector<128xf32> to vector<1x128xf32>
    %38 = arith.mulf %35, %35 : vector<8x128xf32>
    %cst_19 = arith.constant dense<0.000000e+00> : vector<128xf32>
    %39 = vector.multi_reduction <add>, %38, %cst_19 [0] : vector<8x128xf32> to vector<128xf32>
    %40 = vector.shape_cast %39 : vector<128xf32> to vector<1x128xf32>
    %cst_20 = arith.constant 1.250000e-01 : f32
    %41 = vector.broadcast %cst_20 : f32 to vector<1x128xf32>
    %42 = arith.mulf %37, %41 : vector<1x128xf32>
    %cst_21 = arith.constant 1.250000e-01 : f32
    %43 = vector.broadcast %cst_21 : f32 to vector<1x128xf32>
    %44 = arith.mulf %40, %43 : vector<1x128xf32>
    %45 = arith.mulf %42, %42 : vector<1x128xf32>
    %46 = arith.subf %44, %45 : vector<1x128xf32>
    %cst_22 = arith.constant 0.000000e+00 : f32
    %47 = vector.broadcast %cst_22 : f32 to vector<1x128xf32>
    %48 = arith.maximumf %46, %47 : vector<1x128xf32>
    %cst_23 = arith.constant 9.99999974E-6 : f32
    %49 = vector.broadcast %cst_23 : f32 to vector<1x128xf32>
    %50 = arith.addf %48, %49 : vector<1x128xf32>
    %51 = math.rsqrt %50 : vector<1x128xf32>
    %52 = vector.broadcast %42 : vector<1x128xf32> to vector<8x128xf32>
    %53 = arith.subf %35, %52 : vector<8x128xf32>
    %54 = arith.mulf %5, %51 : vector<1x128xf32>
    %55 = vector.broadcast %54 : vector<1x128xf32> to vector<8x128xf32>
    %56 = arith.mulf %53, %55 : vector<8x128xf32>
    %57 = vector.broadcast %6 : vector<1x128xf32> to vector<8x128xf32>
    %58 = arith.addf %56, %57 : vector<8x128xf32>
    %cst_24 = arith.constant 0.000000e+00 : f32
    %59 = vector.broadcast %cst_24 : f32 to vector<8x128xf32>
    %60 = arith.maximumf %58, %59 : vector<8x128xf32>
    %cst_25 = arith.constant dense<0.000000e+00> : vector<8x128xf32>
    %61 = tpu.matmul %60, %2, %cst_25 {dimension_numbers = #tpu.dot_dimension_numbers<[1], [0], [0], [1], [0, 0, 1, 1], [], []>} : vector<8x128xf32>, vector<128x128xf32>, vector<8x128xf32> -> vector<8x128xf32>
    %62 = vector.broadcast %7 : vector<1x128xf32> to vector<8x128xf32>
    %63 = arith.addf %61, %62 : vector<8x128xf32>
    %c0_26 = arith.constant 0 : index
    %c0_27 = arith.constant 0 : index
    %64 = vector.load %arg2[%c0_26, %c0_27] : memref<8x128xf32, #tpu.memory_space<vmem>>, vector<8x128xf32>
    tpu.vector_store %arg2[%c0_26, %c0_27], %63 {strides = array<i32>} : memref<8x128xf32, #tpu.memory_space<vmem>>, vector<8x128xf32>,
    return
  }
}

</mosaic_0001>

<bundles_post_ra>
// kernel: tpu_custom_call.1
= control target key start
LH: loop header
LB: loop body
LE: loop exit
PB: predicated region body
PF: predicated region fallthrough
CT: control target
= control target key end

     0   :  { %7 = vsyncpa [#allocation3], 0  ;;  %s804_s0 = inlined_call_operand.hbm [shape: f32[8,128], index: 0, kind: input, shape index: {}]   ;;  %s805_s1 = inlined_call_operand.hbm [shape: f32[392,128], index: 1, kind: input, shape index: {}]   ;;  %s806_s2 = inlined_call_operand.hbm [shape: f32[8,128], index: 2, kind: output, shape index: {}]  }
   0x1   :  { %8 = vsyncpa [#allocation6], 0 }
   0x2   :  { %9 = vsyncpa [#allocation4], 0  ;;  %s704_s9 = smov [#allocation2]   ;;  %s705_s11 = smov [#allocation5]  }
   0x3   :  { %s16_s10 = sshll.u32 %s704_s9, 4  ;;  %s25_s12 = sshll.u32 %s705_s11, 4  ;;  %s17_s10 = int_to_ptr.vmem [resolvable:$true] %s16_s10  ;;  %s727_s12 = int_to_ptr.vmem [resolvable:$true] %s25_s12 }
   0x4   :  { %s632_s15 = scalar_lea.hbm %s804_s0, 128 }
   0x5   :  { %p633_p0 = scmp.ne.s32.totalorder %s804_s0, %s632_s15  ;;  %p636_p1 = scmp.lt.u32.totalorder %s632_s15, %s804_s0 }
   0x7   :  { %p638_p2 = pnand %p636_p1, %p633_p0 }
   0x9   :  { %641 = shalt.err (!%p638_p2)
}
   0xa   :  { %s642_s20 = scalar_lea.vmem %s17_s10, 128  ;;  %p647_p4 = scmp.lt.s32.totalorder %s17_s10, %s17_s10 }
   0xb   :  { %p643_p3 = scmp.ne.s32.totalorder %s17_s10, %s642_s20  ;;  %p648_p5 = scmp.lt.s32.totalorder %s642_s20, %s642_s20 }
   0xd   :  { %p649_p6 = por %p648_p5, %p647_p4 }
   0xf   :  { %p650_p7 = pnand %p649_p6, %p643_p3 }
  0x11   :  { %653 = shalt.err (!%p650_p7)
}
  0x12   :  { %19 = dma.hbm_to_vmem [thread:$0]  %s804_s0, 128, %s17_s10, [#allocation3]  }
  0x13   :  { %s654_s25 = scalar_lea.hbm %s805_s1, 6272 }
  0x14   :  { %p655_p8 = scmp.ne.s32.totalorder %s805_s1, %s654_s25  ;;  %p658_p9 = scmp.lt.u32.totalorder %s654_s25, %s805_s1 }
  0x16   :  { %p660_p10 = pnand %p658_p9, %p655_p8 }
  0x18   :  { %663 = shalt.err (!%p660_p10)
}
  0x19   :  { %s664_s30 = scalar_lea.vmem %s727_s12, 6272  ;;  %p669_p12 = scmp.lt.s32.totalorder %s727_s12, %s727_s12 }
  0x1a   :  { %p665_p11 = scmp.ne.s32.totalorder %s727_s12, %s664_s30  ;;  %p670_p13 = scmp.lt.s32.totalorder %s664_s30, %s664_s30 }
  0x1c   :  { %p671_p0 = por %p670_p13, %p669_p12 }
  0x1e   :  { %p672_p1 = pnand %p671_p0, %p665_p11 }
  0x20   :  { %675 = shalt.err (!%p672_p1)
}
  0x21   :  { %s706_s0 = smov 128   ;;  %s707_s3 = smov 8  }
  0x22   :  { %31 = dma.hbm_to_vmem [thread:$0]  %s805_s1, 6272, %s727_s12, [#allocation6], %s706_s0, %s706_s0, %s707_s3  }
  0x23   :  { %698 = dma.done.wait [#allocation3], 128  }
  0x24   :  { %699 = vsyncadd [#allocation3], 4294967168 }
  0x25   :  { %700 = dma.done.wait [#allocation6], 6272  }
  0x26   :  { %701 = vsyncadd [#allocation6], 4294961024  ;;  %v708_v0 = vmov 0.0|0.0   ;;  %vm709_vm0 = vmmov 0   ;;  %v710_v1 = vmov 0.0   ;;  %v38_v2 = vld [vmem:[#allocation5] sm:$0xff] }
  0x27   :  { %548 = vmatprep.subr.bf16.mxu0 %v708_v0  ;;  %475 = vmatprep.mubr.msk.f32.mxu0 %vm709_vm0, %v710_v1  ;;  %v39_v3 = vld [vmem:[#allocation5 + $0x8] sm:$0xff]  ;;  %v40_v4 = vld [vmem:[#allocation5 + $0x10] sm:$0xff]  ;;  %v41_v6 = vld [vmem:[#allocation5 + $0x18] sm:$0xff]  ;;  %s711_s1 = smov [#allocation7]  }
  0x28   :  { %572 = vmatprep.subr.bf16.mxu1 %v708_v0  ;;  %510 = vmatprep.mubr.msk.f32.mxu1 %vm709_vm0, %v710_v1  ;;  %v549_v5 = vpack.c.bf16 %v39_v3, %v38_v2  ;;  %v552_v7 = vpack.c.bf16 %v41_v6, %v40_v4  ;;  %v42_v8 = vld [vmem:[#allocation5 + $0x20] sm:$0xff]  ;;  %v43_v9 = vld [vmem:[#allocation5 + $0x28] sm:$0xff]  ;;  %v44_v11 = vld [vmem:[#allocation5 + $0x30] sm:$0xff]  ;;  %s379_s6 = sshll.u32 %s711_s1, 4  ;;  %s380_s6 = int_to_ptr.vmem [resolvable:$true] %s379_s6 }
  0x29   :  { %v555_v10 = vpack.c.bf16 %v43_v9, %v42_v8  ;;  %v45_v12 = vld [vmem:[#allocation5 + $0x38] sm:$0xff]  ;;  %v46_v14 = vld [vmem:[#allocation5 + $0x40] sm:$0xff]  ;;  %v47_v15 = vld [vmem:[#allocation5 + $0x48] sm:$0xff]  ;;  %v184_v9 = vlaneseq  ;;  %s676_s7 = scalar_lea.vmem %s380_s6, 128  ;;  %p681_p3 = scmp.lt.s32.totalorder %s380_s6, %s380_s6 }
  0x2a   :  { %550 = vmatpush3.bf16.msra.mxu0 %v549_v5  ;;  %v558_v13 = vpack.c.bf16 %v45_v12, %v44_v11  ;;  %v561_v16 = vpack.c.bf16 %v47_v15, %v46_v14  ;;  %v48_v17 = vld [vmem:[#allocation5 + $0x50] sm:$0xff]  ;;  %v49_v18 = vld [vmem:[#allocation5 + $0x58] sm:$0xff]  ;;  %v50_v20 = vld [vmem:[#allocation5 + $0x60] sm:$0xff]  ;;  %p677_p2 = scmp.ne.s32.totalorder %s380_s6, %s676_s7  ;;  %p682_p4 = scmp.lt.s32.totalorder %s676_s7, %s676_s7 }
  0x2b   :  { %551 = vmatprep.subr.bf16.mxu0 %v708_v0  ;;  %v564_v19 = vpack.c.bf16 %v49_v18, %v48_v17  ;;  %v51_v21 = vld [vmem:[#allocation5 + $0x68] sm:$0xff]  ;;  %v52_v23 = vld [vmem:[#allocation5 + $0x70] sm:$0xff]  ;;  %v53_v24 = vld [vmem:[#allocation5 + $0x78] sm:$0xff] }
  0x2c   :  { %v567_v22 = vpack.c.bf16 %v51_v21, %v50_v20  ;;  %v570_v25 = vpack.c.bf16 %v53_v24, %v52_v23  ;;  %v91_v26 = vld [vmem:[#allocation2] sm:$0xff]  ;;  %v54_v27 = vld [vmem:[#allocation5 + $0x80] sm:$0xff]  ;;  %v55_v28 = vld [vmem:[#allocation5 + $0x88] sm:$0xff]  ;;  %p683_p5 = por %p682_p4, %p681_p3 }
  0x2d   :  { %v573_v29 = vpack.c.bf16 %v55_v28, %v54_v27  ;;  %v56_v30 = vld [vmem:[#allocation5 + $0x90] sm:$0xff]  ;;  %v57_v31 = vld [vmem:[#allocation5 + $0x98] sm:$0xff]  ;;  %v58_v33 = vld [vmem:[#allocation5 + $0xa0] sm:$0xff] }
  0x2e   :  { %553 = vmatpush3.bf16.msra.mxu0 %v552_v7  ;;  %v576_v32 = vpack.c.bf16 %v57_v31, %v56_v30  ;;  %v59_v34 = vld [vmem:[#allocation5 + $0xa8] sm:$0xff]  ;;  %v60_v36 = vld [vmem:[#allocation5 + $0xb0] sm:$0xff]  ;;  %v61_v37 = vld [vmem:[#allocation5 + $0xb8] sm:$0xff]  ;;  %p684_p6 = pnand %p683_p5, %p677_p2 }
  0x2f   :  { %554 = vmatprep.subr.bf16.mxu0 %v708_v0  ;;  %574 = vmatpush3.bf16.msra.mxu1 %v573_v29  ;;  %v579_v35 = vpack.c.bf16 %v59_v34, %v58_v33  ;;  %v582_v38 = vpack.c.bf16 %v61_v37, %v60_v36  ;;  %v62_v39 = vld [vmem:[#allocation5 + $0xc0] sm:$0xff]  ;;  %v63_v40 = vld [vmem:[#allocation5 + $0xc8] sm:$0xff]  ;;  %v64_v42 = vld [vmem:[#allocation5 + $0xd0] sm:$0xff] }
  0x30   :  { %575 = vmatprep.subr.bf16.mxu1 %v708_v0  ;;  %v585_v41 = vpack.c.bf16 %v63_v40, %v62_v39  ;;  %v65_v43 = vld [vmem:[#allocation5 + $0xd8] sm:$0xff]  ;;  %v66_v45 = vld [vmem:[#allocation5 + $0xe0] sm:$0xff]  ;;  %v67_v46 = vld [vmem:[#allocation5 + $0xe8] sm:$0xff] }
  0x31   :  { %v588_v44 = vpack.c.bf16 %v65_v43, %v64_v42  ;;  %v591_v47 = vpack.c.bf16 %v67_v46, %v66_v45  ;;  %v68_v48 = vld [vmem:[#allocation5 + $0xf0] sm:$0xff]  ;;  %v69_v49 = vld [vmem:[#allocation5 + $0xf8] sm:$0xff]  ;;  %v86_v11 = vld [vmem:[#allocation5 + $0x180] sm:$0x1] }
  0x32   :  { %556 = vmatpush3.bf16.msra.mxu0 %v555_v10  ;;  %v594_v50 = vpack.c.bf16 %v69_v49, %v68_v48  ;;  %v778_v10 = vshrl.u32 %v184_v9, 7  ;;  %v389_v17 = vld [vmem:[#allocation5 + $0x181] ss:$0 sm:$0xff]  ;;  %v72_v24 = vld [vmem:[#allocation5 + $0x110] sm:$0xff]  ;;  %v75_v28 = vld [vmem:[#allocation5 + $0x128] sm:$0xff] }
  0x33   :  { %557 = vmatprep.subr.bf16.mxu0 %v708_v0  ;;  %577 = vmatpush3.bf16.msra.mxu1 %v576_v32  ;;  %v70_v21 = vld [vmem:[#allocation5 + $0x100] sm:$0xff]  ;;  %v76_v30 = vld [vmem:[#allocation5 + $0x130] sm:$0xff]  ;;  %v77_v31 = vld [vmem:[#allocation5 + $0x138] sm:$0xff] }
  0x34   :  { %578 = vmatprep.subr.bf16.mxu1 %v708_v0  ;;  %v186_v12 = vsub.s32 0, %v778_v10  ;;  %v74_v27 = vld [vmem:[#allocation5 + $0x120] sm:$0xff]  ;;  %v606_v32 = vpack.c.bf16 %v77_v31, %v76_v30  ;;  %v79_v34 = vld [vmem:[#allocation5 + $0x148] sm:$0xff]  ;;  %v80_v36 = vld [vmem:[#allocation5 + $0x150] sm:$0xff] }
  0x35   :  { %v603_v29 = vpack.c.bf16 %v75_v28, %v74_v27  ;;  %v78_v33 = vld [vmem:[#allocation5 + $0x140] sm:$0xff]  ;;  %v81_v37 = vld [vmem:[#allocation5 + $0x158] sm:$0xff]  ;;  %v83_v40 = vld [vmem:[#allocation5 + $0x168] sm:$0xff] }
  0x36   :  { %559 = vmatpush3.bf16.msra.mxu0 %v558_v13  ;;  %v82_v39 = vld [vmem:[#allocation5 + $0x160] sm:$0xff]  ;;  %v84_v42 = vld [vmem:[#allocation5 + $0x170] sm:$0xff]  ;;  %v85_v43 = vld [vmem:[#allocation5 + $0x178] sm:$0xff] }
  0x37   :  { %560 = vmatprep.subr.bf16.mxu0 %v708_v0  ;;  %580 = vmatpush3.bf16.msra.mxu1 %v579_v35  ;;  %v609_v35 = vpack.c.bf16 %v79_v34, %v78_v33 }
  0x38   :  { %581 = vmatprep.subr.bf16.mxu1 %v708_v0 }
  0x3a   :  { %562 = vmatpush3.bf16.msra.mxu0 %v561_v16 }
  0x3b   :  { %563 = vmatprep.subr.bf16.mxu0 %v708_v0  ;;  %583 = vmatpush3.bf16.msra.mxu1 %v582_v38  ;;  %v612_v38 = vpack.c.bf16 %v81_v37, %v80_v36 }
  0x3c   :  { %584 = vmatprep.subr.bf16.mxu1 %v708_v0 }
  0x3e   :  { %565 = vmatpush3.bf16.msra.mxu0 %v564_v19 }
  0x3f   :  { %566 = vmatprep.subr.bf16.mxu0 %v708_v0  ;;  %586 = vmatpush3.bf16.msra.mxu1 %v585_v41  ;;  %v615_v41 = vpack.c.bf16 %v83_v40, %v82_v39 }
  0x40   :  { %587 = vmatprep.subr.bf16.mxu1 %v708_v0 }
  0x42   :  { %568 = vmatpush3.bf16.msra.mxu0 %v567_v22  ;;  %v71_v22 = vld [vmem:[#allocation5 + $0x108] sm:$0xff] }
  0x43   :  { %569 = vmatprep.subr.bf16.mxu0 %v708_v0  ;;  %589 = vmatpush3.bf16.msra.mxu1 %v588_v44  ;;  %v597_v23 = vpack.c.bf16 %v71_v22, %v70_v21  ;;  %v618_v44 = vpack.c.bf16 %v85_v43, %v84_v42 }
  0x44   :  { %590 = vmatprep.subr.bf16.mxu1 %v708_v0 }
  0x46   :  { %571 = vmatpush3.bf16.msra.mxu0 %v570_v25  ;;  %v73_v25 = vld [vmem:[#allocation5 + $0x118] sm:$0xff] }
  0x47   :  { %596 = vmatprep.subr.bf16.mxu0 %v708_v0  ;;  %592 = vmatpush3.bf16.msra.mxu1 %v591_v47 }
  0x48   :  { %593 = vmatprep.subr.bf16.mxu1 %v708_v0 }
  0x49   :  { %476 = vmatmul.mubr.f32.vlgmr.msra.gmra.mrb[0].mxu0 %v91_v26  ;;  %v600_v26 = vpack.c.bf16 %v73_v25, %v72_v24 }
  0x4a   :  { %545 = vmatprep.mubr.msk.f32.mxu0 %vm709_vm0, %v710_v1  ;;  %598 = vmatpush3.bf16.msra.mxu0 %v597_v23 }
  0x4b   :  { %595 = vmatpush3.bf16.msra.mxu1 %v594_v50  ;;  %599 = vmatprep.subr.bf16.mxu0 %v708_v0 }
  0x4e   :  { %601 = vmatpush3.bf16.msra.mxu0 %v600_v26 }
  0x4f   :  { %602 = vmatprep.subr.bf16.mxu0 %v708_v0 }
  0x52   :  { %604 = vmatpush3.bf16.msra.mxu0 %v603_v29 }
  0x53   :  { %605 = vmatprep.subr.bf16.mxu0 %v708_v0 }
  0x56   :  { %607 = vmatpush3.bf16.msra.mxu0 %v606_v32 }
  0x57   :  { %608 = vmatprep.subr.bf16.mxu0 %v708_v0 }
  0x5a   :  { %610 = vmatpush3.bf16.msra.mxu0 %v609_v35 }
  0x5b   :  { %611 = vmatprep.subr.bf16.mxu0 %v708_v0 }
  0x5e   :  { %613 = vmatpush3.bf16.msra.mxu0 %v612_v38 }
  0x5f   :  { %614 = vmatprep.subr.bf16.mxu0 %v708_v0 }
  0x62   :  { %616 = vmatpush3.bf16.msra.mxu0 %v615_v41 }
  0x63   :  { %617 = vmatprep.subr.bf16.mxu0 %v708_v0 }
  0x66   :  { %619 = vmatpush3.bf16.msra.mxu0 %v618_v44 }
 0x11c   :  { %v158_v51 = vpop.f32.mrb[0].mxu0 }
 0x11d   :  { %v162_v52 = vrot.slane %v158_v51, 4  ;;  %v168_v53 = vmul.f32 %v158_v51, %v158_v51  ;;  %v477_v54 = vpop.f32.mrb[1].mxu0 }
 0x11f   :  { %v163_v55 = vadd.f32 %v162_v52, %v158_v51  ;;  %v169_v56 = vrot.slane %v168_v53, 4 }
 0x121   :  { %v164_v57 = vrot.slane %v163_v55, 2  ;;  %v170_v58 = vadd.f32 %v169_v56, %v168_v53 }
 0x123   :  { %v165_v59 = vadd.f32 %v164_v57, %v163_v55  ;;  %v171_v60 = vrot.slane %v170_v58, 2 }
 0x125   :  { %v166_v61 = vrot.slane %v165_v59, 1  ;;  %v172_v62 = vadd.f32 %v171_v60, %v170_v58 }
 0x127   :  { %v167_v63 = vadd.f32 %v166_v61, %v165_v59  ;;  %v173_v1 = vrot.slane %v172_v62, 1 }
 0x129   :  { %v174_v2 = vadd.f32 %v173_v1, %v172_v62  ;;  %v175_v3 = vmul.f32 0.125, %v167_v63 }
 0x12b   :  { %v176_v4 = vmul.f32 0.125, %v174_v2  ;;  %v177_v5 = vmul.f32 %v175_v3, %v175_v3  ;;  %v182_v15 = vsub.f32 %v158_v51, %v175_v3  ;;  %v88_v2 = vld [vmem:[#allocation5 + $0x182] sm:$0x1] }
 0x12d   :  { %v178_v6 = vsub.f32 %v176_v4, %v177_v5 }
 0x12f   :  { %v179_v7 = vmax.f32 %v178_v6, 0.0 }
 0x131   :  { %v180_v8 = vadd.f32 1e-05, %v179_v7  ;;  %v390_v7 = vld [vmem:[#allocation5 + $0x183] ss:$0 sm:$0xff] }
 0x133   :  { %628 = vrsqrt.f32 %v180_v8 }
 0x13d   :  { %v629_v13 = vpop.eup %628 }
 0x13e   :  { %v183_v14 = vmul.f32 %v629_v13, %v86_v11  ;;  %v391_v13 = vld [vmem:[#allocation5 + $0x184] ss:$0 sm:$0xff] }
 0x140   :  { %v187_v16 = vrot.slane %v183_v14, %v186_v12 }
 0x142   :  { %v188_v18 = vmul.f32 %v187_v16, %v182_v15 }
 0x144   :  { %v193_v19 = vadd.f32 %v389_v17, %v188_v18 }
 0x146   :  { %v194_v20 = vmax.f32 %v193_v19, 0.0 }
 0x148   :  { %511 = vmatmul.mubr.f32.vlgmr.msra.gmra.mrb[0].mxu1 %v194_v20 }
 0x21b   :  { %v261_v45 = vpop.f32.mrb[0].mxu1 }
 0x21c   :  { %v265_v46 = vrot.slane %v261_v45, 4  ;;  %v271_v47 = vmul.f32 %v261_v45, %v261_v45  ;;  %v512_v48 = vpop.f32.mrb[1].mxu1 }
 0x21e   :  { %v266_v49 = vadd.f32 %v265_v46, %v261_v45  ;;  %v272_v50 = vrot.slane %v271_v47, 4 }
 0x220   :  { %v267_v51 = vrot.slane %v266_v49, 2  ;;  %v273_v52 = vadd.f32 %v272_v50, %v271_v47 }
 0x222   :  { %v268_v53 = vadd.f32 %v267_v51, %v266_v49  ;;  %v274_v54 = vrot.slane %v273_v52, 2 }
 0x224   :  { %v269_v55 = vrot.slane %v268_v53, 1  ;;  %v275_v56 = vadd.f32 %v274_v54, %v273_v52 }
 0x226   :  { %v270_v57 = vadd.f32 %v269_v55, %v268_v53  ;;  %v276_v58 = vrot.slane %v275_v56, 1 }
 0x228   :  { %v277_v59 = vadd.f32 %v276_v58, %v275_v56  ;;  %v278_v0 = vmul.f32 0.125, %v270_v57 }
 0x22a   :  { %v279_v60 = vmul.f32 0.125, %v277_v59  ;;  %v280_v61 = vmul.f32 %v278_v0, %v278_v0  ;;  %v285_v5 = vsub.f32 %v261_v45, %v278_v0 }
 0x22c   :  { %v281_v62 = vsub.f32 %v279_v60, %v280_v61 }
 0x22e   :  { %v282_v63 = vmax.f32 %v281_v62, 0.0 }
 0x230   :  { %v283_v1 = vadd.f32 1e-05, %v282_v63 }
 0x232   :  { %630 = vrsqrt.f32 %v283_v1 }
 0x23c   :  { %v631_v3 = vpop.eup %630 }
 0x23d   :  { %v286_v4 = vmul.f32 %v631_v3, %v88_v2 }
 0x23f   :  { %v290_v6 = vrot.slane %v286_v4, %v186_v12 }
 0x241   :  { %v291_v8 = vmul.f32 %v290_v6, %v285_v5 }
 0x243   :  { %v296_v9 = vadd.f32 %v390_v7, %v291_v8 }
 0x245   :  { %v297_v11 = vmax.f32 %v296_v9, 0.0 }
 0x247   :  { %546 = vmatmul.mubr.f32.vlgmr.msra.gmra.mrb[2].mxu0 %v297_v11 }
 0x31a   :  { %v368_v14 = vpop.f32.mrb[2].mxu0 }
 0x31b   :  { %v369_v15 = vadd.f32 %v391_v13, %v368_v14  ;;  %v547_v16 = vpop.f32.mrb[3].mxu0 }
 0x31d   :  { %372 = vst [vmem:[#allocation7] sm:$0xff] %v369_v15 }
 0x31e   :  { %687 = shalt.err (!%p684_p6)
}
 0x31f   :  { %s688_s10 = scalar_lea.hbm %s806_s2, 128 }
 0x320   :  { %p689_p7 = scmp.ne.s32.totalorder %s806_s2, %s688_s10  ;;  %p692_p8 = scmp.lt.u32.totalorder %s688_s10, %s806_s2 }
 0x322   :  { %p694_p9 = pnand %p692_p8, %p689_p7 }
 0x324   :  { %697 = shalt.err (!%p694_p9)
}
 0x325   :  { %382 = dma.vmem_to_hbm [thread:$0]  %s380_s6, 128, %s806_s2, [#allocation4]  }
 0x326   :  { %702 = dma.done.wait [#allocation4], 128  }
 0x327   :  { %703 = vsyncadd [#allocation4], 4294967168 }
 0x328   :  { %386 = vsyncpa [#allocation3], 1 }
 0x329   :  { %387 = vsyncpa [#allocation6], 1 }
 0x32a   :  { %388 = vsyncpa [#allocation4], 1 }

</bundles_post_ra>
